<compile_context>
chip_gen: v7x
topology: tpu7x:2x2x1
jax: 0.10.0
libtpu: 0.0.40
codegen_flags: <defaults>
</compile_context>

<pallas_src>
import jax
import jax.numpy as jnp
from jax import lax
from jax.experimental import pallas as pl
from jax.experimental.pallas import tpu as pltpu

IN_DIM = 2          # nn.Linear(2, 15)
HID_DIM = 15
OUT_DIM = 2         # nn.Linear(15, 2)

SUBLANE_FOLD = 8    # batch chunks folded onto the sublane axis
LANE_GRANULE = 128  # vreg lane granule
LANE_CHUNK = 1024   # in-kernel lane chunk: bounds live temporaries to (8, 1024) f32
PARAM_WORDS = 64    # 4*15 weights/biases + 1 logit-diff bias, padded to 64 words


def _round_up(a, m):
    return ((a + m - 1) // m) * m


def net_kernel(params_ref, x_ref, out_ref):
    # params_ref: SMEM (64,) f32 =
    #   [0:15]  w1[0, :]   (input-0 weights of the hidden units)
    #   [15:30] w1[1, :]   (input-1 weights)
    #   [30:45] b1         (hidden biases)
    #   [45:60] wd = w2[:,1] - w2[:,0]   (logit-difference weights)
    #   [60]    bd = b2[1] - b2[0]       (logit-difference bias)
    # x_ref / out_ref: (16, tile) VMEM blocks; rows 0..7 = feature-0 / p(class0)
    # chunks, rows 8..15 = feature-1 / p(class1) chunks (same column = same
    # batch element within a chunk).

    # Hoist all scalars once per grid step (cheap SMEM scalar loads).
    w0 = [params_ref[j] for j in range(HID_DIM)]
    w1 = [params_ref[HID_DIM + j] for j in range(HID_DIM)]
    b1 = [params_ref[2 * HID_DIM + j] for j in range(HID_DIM)]
    wd = [params_ref[3 * HID_DIM + j] for j in range(HID_DIM)]
    bd = params_ref[4 * HID_DIM]

    tile = x_ref.shape[1]
    chunk = min(LANE_CHUNK, tile)

    def do_cols(col, width):
        sl = pl.ds(col, width)
        x0 = x_ref[0:SUBLANE_FOLD, sl].astype(jnp.float32)                 # (8, w)
        x1 = x_ref[SUBLANE_FOLD:2 * SUBLANE_FOLD, sl].astype(jnp.float32)  # (8, w)
        # Layer 1 + ReLU + layer-2 logit difference, as scalar-broadcast VPU
        # FMAs accumulated directly into d (no h slab, no cross-sublane reduce).
        d = jnp.zeros((SUBLANE_FOLD, width), jnp.float32) + bd
        for j in range(HID_DIM):
            h = jnp.maximum(x0 * w0[j] + x1 * w1[j] + b1[j], 0.0)
            d = d + h * wd[j]
        # softmax([l0, l1]) == [1 - sigmoid(d), sigmoid(d)],   d = l1 - l0.
        d = jnp.maximum(d, -80.0)              # keep exp finite on padded columns
        e = jnp.exp(-d)                        # EUP
        den = 1.0 + e
        inv = pl.reciprocal(den, approx=True)  # EUP divide (off the VALU path)
        inv = inv * (2.0 - den * inv)          # one Newton step -> f32-accurate
        out_ref[0:SUBLANE_FOLD, sl] = (1.0 - inv).astype(out_ref.dtype)          # p0
        out_ref[SUBLANE_FOLD:2 * SUBLANE_FOLD, sl] = inv.astype(out_ref.dtype)   # p1

    n_full = tile // chunk
    rem = tile - n_full * chunk

    def body(c, carry):
        do_cols(pl.multiple_of(c * chunk, chunk), chunk)
        return carry

    lax.fori_loop(0, n_full, body, 0)
    if rem:                                    # static tail (tile is trace-time const)
        do_cols(n_full * chunk, rem)


def pack_params(w1, b1, w2, b2):
    """Pack all Linear parameters into one (64,) f32 SMEM-resident vector."""
    w1 = jnp.asarray(w1, jnp.float32)                     # (2, 15)
    b1 = jnp.asarray(b1, jnp.float32).reshape(HID_DIM)    # (15,)
    w2 = jnp.asarray(w2, jnp.float32)                     # (15, 2)
    b2 = jnp.asarray(b2, jnp.float32).reshape(OUT_DIM)    # (2,)
    wd = w2[:, 1] - w2[:, 0]                              # (15,)
    bd = b2[1] - b2[0]                                    # ()
    flat = jnp.concatenate([w1[0], w1[1], b1, wd, bd[None]])   # (61,)
    return jnp.zeros((PARAM_WORDS,), jnp.float32).at[: 4 * HID_DIM + 1].set(flat)


def net_forward(x, w1, b1, w2, b2, *, target_lanes=16 * 1024):
    """x: (N, 2) f32/bf16 -> (N, 2) softmax probabilities (dtype preserved)."""
    n = x.shape[0]
    out_dtype = x.dtype
    params = pack_params(w1, b1, w2, b2)                  # (64,) f32 -> SMEM

    # Pad the batch only to the 8x128 = 1024-element layout granule (never to a
    # full tile), then derive grid steps and the per-step lane-tile.
    granule = SUBLANE_FOLD * LANE_GRANULE
    n_pad0 = _round_up(max(n, 1), granule)
    c0 = n_pad0 // SUBLANE_FOLD                           # lane columns before tiling

    g = pl.cdiv(c0, target_lanes)                         # number of grid steps
    if c0 >= 2 * 4096:                                    # enough work: keep >=2 even
        g = max(g, 2)                                     # steps so v7x uses both TCs
    if g > 1 and g % 2:
        g += 1
    tile = _round_up(pl.cdiv(c0, g), LANE_GRANULE)        # lanes per grid step
    cols = tile * g
    n_pad = SUBLANE_FOLD * cols

    # Single fused pad+transpose pass; the (2, n_pad) -> (16, cols) reshape is
    # contiguous (rows 0..7 = feature-0 chunks, rows 8..15 = feature-1) and free.
    # NOTE: a feature-major (2, N) I/O contract would remove this extra HBM pass.
    xt = jnp.zeros((2, n_pad), x.dtype).at[:, :n].set(x.T)
    xp = xt.reshape(2 * SUBLANE_FOLD, cols)

    out_p = pl.pallas_call(
        net_kernel,
        out_shape=jax.ShapeDtypeStruct((2 * SUBLANE_FOLD, cols), out_dtype),
        grid_spec=pltpu.PrefetchScalarGridSpec(
            num_scalar_prefetch=0,
            grid=(g,),
            in_specs=[
                pl.BlockSpec(memory_space=pltpu.MemorySpace.SMEM),          # params
                pl.BlockSpec((2 * SUBLANE_FOLD, tile), lambda i: (0, i)),   # x tiles
            ],
            out_specs=pl.BlockSpec((2 * SUBLANE_FOLD, tile), lambda i: (0, i)),
        ),
        compiler_params=pltpu.CompilerParams(
            dimension_semantics=("parallel",)),
    )(params, xp)

    # Rows 0..7 are p(class0) chunks, rows 8..15 are p(class1) chunks.
    return out_p.reshape(2, n_pad)[:, :n].T


def init_params(key):
    # Deterministic init mimicking nn.Linear default: U(-1/sqrt(fan_in), +1/sqrt(fan_in)).
    k1, k2, k3, k4 = jax.random.split(key, 4)
    bound1 = 1.0 / jnp.sqrt(IN_DIM)
    bound2 = 1.0 / jnp.sqrt(HID_DIM)
    w1 = jax.random.uniform(k1, (IN_DIM, HID_DIM), jnp.float32, -bound1, bound1)
    b1 = jax.random.uniform(k2, (1, HID_DIM), jnp.float32, -bound1, bound1)
    w2 = jax.random.uniform(k3, (HID_DIM, OUT_DIM), jnp.float32, -bound2, bound2)
    b2 = jax.random.uniform(k4, (1, OUT_DIM), jnp.float32, -bound2, bound2)
    return w1, b1, w2, b2


def reference_forward(x, w1, b1, w2, b2):
    h = jnp.maximum(x @ w1 + b1, 0.0)
    logits = h @ w2 + b2
    return jax.nn.softmax(logits, axis=1)


if __name__ == "__main__":
    key = jax.random.PRNGKey(0)
    kp, kx0, kx1 = jax.random.split(key, 3)

    # Mirror the script's data generation at small scale:
    #   x0 ~ N(+2, 1), x1 ~ N(-2, 1), concatenated along batch.
    ones = jnp.ones((8, IN_DIM), jnp.float32)
    x0 = 2.0 * ones + jax.random.normal(kx0, (8, IN_DIM), jnp.float32)
    x1 = -2.0 * ones + jax.random.normal(kx1, (8, IN_DIM), jnp.float32)
    x = jnp.concatenate([x0, x1], axis=0)           # (16, 2) float32

    w1, b1, w2, b2 = init_params(kp)

    out = net_forward(x, w1, b1, w2, b2)
    out = jax.block_until_ready(out)

    ref = reference_forward(x, w1, b1, w2, b2)
    assert out.shape == (16, OUT_DIM)
    assert jnp.allclose(out, ref, atol=5e-5, rtol=5e-5)
    # Softmax rows sum to 1 (exact by construction: p0 = 1 - p1).
    assert jnp.allclose(jnp.sum(out, axis=1), jnp.ones(16), atol=1e-6)

    print("KERNEL_OK")
</pallas_src>

<mosaic_0001>
module attributes {stable_mosaic.version = 11 : i64} {
  func.func @net_kernel(%arg0: i32, %arg1: memref<64xf32, #tpu.memory_space<smem>>, %arg2: memref<16x128xf32, #tpu.memory_space<vmem>>, %arg3: memref<16x128xf32, #tpu.memory_space<vmem>>) attributes {dimension_semantics = [#tpu.dimension_semantics<parallel>], iteration_bounds = array<i64: 1>, scalar_prefetch = 0 : i64, scratch_operands = 0 : i64, tpu.core_type = #tpu.core_type<tc>, window_params = [{transform_indices = @transform_0, window_bounds = array<i64: 64>}, {transform_indices = @transform_1, window_bounds = array<i64: 16, 128>}, {transform_indices = @transform_2, window_bounds = array<i64: 16, 128>}]} {
    %c0 = arith.constant 0 : index
    %0 = memref.load %arg1[%c0] : memref<64xf32, #tpu.memory_space<smem>>
    %c1 = arith.constant 1 : index
    %1 = memref.load %arg1[%c1] : memref<64xf32, #tpu.memory_space<smem>>
    %c2 = arith.constant 2 : index
    %2 = memref.load %arg1[%c2] : memref<64xf32, #tpu.memory_space<smem>>
    %c3 = arith.constant 3 : index
    %3 = memref.load %arg1[%c3] : memref<64xf32, #tpu.memory_space<smem>>
    %c4 = arith.constant 4 : index
    %4 = memref.load %arg1[%c4] : memref<64xf32, #tpu.memory_space<smem>>
    %c5 = arith.constant 5 : index
    %5 = memref.load %arg1[%c5] : memref<64xf32, #tpu.memory_space<smem>>
    %c6 = arith.constant 6 : index
    %6 = memref.load %arg1[%c6] : memref<64xf32, #tpu.memory_space<smem>>
    %c7 = arith.constant 7 : index
    %7 = memref.load %arg1[%c7] : memref<64xf32, #tpu.memory_space<smem>>
    %c8 = arith.constant 8 : index
    %8 = memref.load %arg1[%c8] : memref<64xf32, #tpu.memory_space<smem>>
    %c9 = arith.constant 9 : index
    %9 = memref.load %arg1[%c9] : memref<64xf32, #tpu.memory_space<smem>>
    %c10 = arith.constant 10 : index
    %10 = memref.load %arg1[%c10] : memref<64xf32, #tpu.memory_space<smem>>
    %c11 = arith.constant 11 : index
    %11 = memref.load %arg1[%c11] : memref<64xf32, #tpu.memory_space<smem>>
    %c12 = arith.constant 12 : index
    %12 = memref.load %arg1[%c12] : memref<64xf32, #tpu.memory_space<smem>>
    %c13 = arith.constant 13 : index
    %13 = memref.load %arg1[%c13] : memref<64xf32, #tpu.memory_space<smem>>
    %c14 = arith.constant 14 : index
    %14 = memref.load %arg1[%c14] : memref<64xf32, #tpu.memory_space<smem>>
    %c15 = arith.constant 15 : index
    %15 = memref.load %arg1[%c15] : memref<64xf32, #tpu.memory_space<smem>>
    %c16 = arith.constant 16 : index
    %16 = memref.load %arg1[%c16] : memref<64xf32, #tpu.memory_space<smem>>
    %c17 = arith.constant 17 : index
    %17 = memref.load %arg1[%c17] : memref<64xf32, #tpu.memory_space<smem>>
    %c18 = arith.constant 18 : index
    %18 = memref.load %arg1[%c18] : memref<64xf32, #tpu.memory_space<smem>>
    %c19 = arith.constant 19 : index
    %19 = memref.load %arg1[%c19] : memref<64xf32, #tpu.memory_space<smem>>
    %c20 = arith.constant 20 : index
    %20 = memref.load %arg1[%c20] : memref<64xf32, #tpu.memory_space<smem>>
    %c21 = arith.constant 21 : index
    %21 = memref.load %arg1[%c21] : memref<64xf32, #tpu.memory_space<smem>>
    %c22 = arith.constant 22 : index
    %22 = memref.load %arg1[%c22] : memref<64xf32, #tpu.memory_space<smem>>
    %c23 = arith.constant 23 : index
    %23 = memref.load %arg1[%c23] : memref<64xf32, #tpu.memory_space<smem>>
    %c24 = arith.constant 24 : index
    %24 = memref.load %arg1[%c24] : memref<64xf32, #tpu.memory_space<smem>>
    %c25 = arith.constant 25 : index
    %25 = memref.load %arg1[%c25] : memref<64xf32, #tpu.memory_space<smem>>
    %c26 = arith.constant 26 : index
    %26 = memref.load %arg1[%c26] : memref<64xf32, #tpu.memory_space<smem>>
    %c27 = arith.constant 27 : index
    %27 = memref.load %arg1[%c27] : memref<64xf32, #tpu.memory_space<smem>>
    %c28 = arith.constant 28 : index
    %28 = memref.load %arg1[%c28] : memref<64xf32, #tpu.memory_space<smem>>
    %c29 = arith.constant 29 : index
    %29 = memref.load %arg1[%c29] : memref<64xf32, #tpu.memory_space<smem>>
    %c30 = arith.constant 30 : index
    %30 = memref.load %arg1[%c30] : memref<64xf32, #tpu.memory_space<smem>>
    %c31 = arith.constant 31 : index
    %31 = memref.load %arg1[%c31] : memref<64xf32, #tpu.memory_space<smem>>
    %c32 = arith.constant 32 : index
    %32 = memref.load %arg1[%c32] : memref<64xf32, #tpu.memory_space<smem>>
    %c33 = arith.constant 33 : index
    %33 = memref.load %arg1[%c33] : memref<64xf32, #tpu.memory_space<smem>>
    %c34 = arith.constant 34 : index
    %34 = memref.load %arg1[%c34] : memref<64xf32, #tpu.memory_space<smem>>
    %c35 = arith.constant 35 : index
    %35 = memref.load %arg1[%c35] : memref<64xf32, #tpu.memory_space<smem>>
    %c36 = arith.constant 36 : index
    %36 = memref.load %arg1[%c36] : memref<64xf32, #tpu.memory_space<smem>>
    %c37 = arith.constant 37 : index
    %37 = memref.load %arg1[%c37] : memref<64xf32, #tpu.memory_space<smem>>
    %c38 = arith.constant 38 : index
    %38 = memref.load %arg1[%c38] : memref<64xf32, #tpu.memory_space<smem>>
    %c39 = arith.constant 39 : index
    %39 = memref.load %arg1[%c39] : memref<64xf32, #tpu.memory_space<smem>>
    %c40 = arith.constant 40 : index
    %40 = memref.load %arg1[%c40] : memref<64xf32, #tpu.memory_space<smem>>
    %c41 = arith.constant 41 : index
    %41 = memref.load %arg1[%c41] : memref<64xf32, #tpu.memory_space<smem>>
    %c42 = arith.constant 42 : index
    %42 = memref.load %arg1[%c42] : memref<64xf32, #tpu.memory_space<smem>>
    %c43 = arith.constant 43 : index
    %43 = memref.load %arg1[%c43] : memref<64xf32, #tpu.memory_space<smem>>
    %c44 = arith.constant 44 : index
    %44 = memref.load %arg1[%c44] : memref<64xf32, #tpu.memory_space<smem>>
    %c45 = arith.constant 45 : index
    %45 = memref.load %arg1[%c45] : memref<64xf32, #tpu.memory_space<smem>>
    %c46 = arith.constant 46 : index
    %46 = memref.load %arg1[%c46] : memref<64xf32, #tpu.memory_space<smem>>
    %c47 = arith.constant 47 : index
    %47 = memref.load %arg1[%c47] : memref<64xf32, #tpu.memory_space<smem>>
    %c48 = arith.constant 48 : index
    %48 = memref.load %arg1[%c48] : memref<64xf32, #tpu.memory_space<smem>>
    %c49 = arith.constant 49 : index
    %49 = memref.load %arg1[%c49] : memref<64xf32, #tpu.memory_space<smem>>
    %c50 = arith.constant 50 : index
    %50 = memref.load %arg1[%c50] : memref<64xf32, #tpu.memory_space<smem>>
    %c51 = arith.constant 51 : index
    %51 = memref.load %arg1[%c51] : memref<64xf32, #tpu.memory_space<smem>>
    %c52 = arith.constant 52 : index
    %52 = memref.load %arg1[%c52] : memref<64xf32, #tpu.memory_space<smem>>
    %c53 = arith.constant 53 : index
    %53 = memref.load %arg1[%c53] : memref<64xf32, #tpu.memory_space<smem>>
    %c54 = arith.constant 54 : index
    %54 = memref.load %arg1[%c54] : memref<64xf32, #tpu.memory_space<smem>>
    %c55 = arith.constant 55 : index
    %55 = memref.load %arg1[%c55] : memref<64xf32, #tpu.memory_space<smem>>
    %c56 = arith.constant 56 : index
    %56 = memref.load %arg1[%c56] : memref<64xf32, #tpu.memory_space<smem>>
    %c57 = arith.constant 57 : index
    %57 = memref.load %arg1[%c57] : memref<64xf32, #tpu.memory_space<smem>>
    %c58 = arith.constant 58 : index
    %58 = memref.load %arg1[%c58] : memref<64xf32, #tpu.memory_space<smem>>
    %c59 = arith.constant 59 : index
    %59 = memref.load %arg1[%c59] : memref<64xf32, #tpu.memory_space<smem>>
    %c60 = arith.constant 60 : index
    %60 = memref.load %arg1[%c60] : memref<64xf32, #tpu.memory_space<smem>>
    %c0_i32 = arith.constant 0 : i32
    %c128_i32 = arith.constant 128 : i32
    %61 = arith.muli %c0_i32, %c128_i32 : i32
    %62 = tpu.assume_multiple %61, 128 : i32
    %c0_0 = arith.constant 0 : index
    %63 = arith.index_cast %62 : i32 to index
    %64 = vector.load %arg2[%c0_0, %63] : memref<16x128xf32, #tpu.memory_space<vmem>>, vector<8x128xf32>
    %c8_1 = arith.constant 8 : index
    %65 = arith.index_cast %62 : i32 to index
    %66 = vector.load %arg2[%c8_1, %65] : memref<16x128xf32, #tpu.memory_space<vmem>>, vector<8x128xf32>
    %cst = arith.constant 0.000000e+00 : f32
    %67 = vector.broadcast %cst : f32 to vector<8x128xf32>
    %68 = vector.broadcast %60 : f32 to vector<8x128xf32>
    %69 = arith.addf %67, %68 : vector<8x128xf32>
    %70 = vector.broadcast %0 : f32 to vector<8x128xf32>
    %71 = arith.mulf %64, %70 : vector<8x128xf32>
    %72 = vector.broadcast %15 : f32 to vector<8x128xf32>
    %73 = arith.mulf %66, %72 : vector<8x128xf32>
    %74 = arith.addf %71, %73 : vector<8x128xf32>
    %75 = vector.broadcast %30 : f32 to vector<8x128xf32>
    %76 = arith.addf %74, %75 : vector<8x128xf32>
    %cst_2 = arith.constant 0.000000e+00 : f32
    %77 = vector.broadcast %cst_2 : f32 to vector<8x128xf32>
    %78 = arith.maximumf %76, %77 : vector<8x128xf32>
    %79 = vector.broadcast %45 : f32 to vector<8x128xf32>
    %80 = arith.mulf %78, %79 : vector<8x128xf32>
    %81 = arith.addf %69, %80 : vector<8x128xf32>
    %82 = vector.broadcast %1 : f32 to vector<8x128xf32>
    %83 = arith.mulf %64, %82 : vector<8x128xf32>
    %84 = vector.broadcast %16 : f32 to vector<8x128xf32>
    %85 = arith.mulf %66, %84 : vector<8x128xf32>
    %86 = arith.addf %83, %85 : vector<8x128xf32>
    %87 = vector.broadcast %31 : f32 to vector<8x128xf32>
    %88 = arith.addf %86, %87 : vector<8x128xf32>
    %cst_3 = arith.constant 0.000000e+00 : f32
    %89 = vector.broadcast %cst_3 : f32 to vector<8x128xf32>
    %90 = arith.maximumf %88, %89 : vector<8x128xf32>
    %91 = vector.broadcast %46 : f32 to vector<8x128xf32>
    %92 = arith.mulf %90, %91 : vector<8x128xf32>
    %93 = arith.addf %81, %92 : vector<8x128xf32>
    %94 = vector.broadcast %2 : f32 to vector<8x128xf32>
    %95 = arith.mulf %64, %94 : vector<8x128xf32>
    %96 = vector.broadcast %17 : f32 to vector<8x128xf32>
    %97 = arith.mulf %66, %96 : vector<8x128xf32>
    %98 = arith.addf %95, %97 : vector<8x128xf32>
    %99 = vector.broadcast %32 : f32 to vector<8x128xf32>
    %100 = arith.addf %98, %99 : vector<8x128xf32>
    %cst_4 = arith.constant 0.000000e+00 : f32
    %101 = vector.broadcast %cst_4 : f32 to vector<8x128xf32>
    %102 = arith.maximumf %100, %101 : vector<8x128xf32>
    %103 = vector.broadcast %47 : f32 to vector<8x128xf32>
    %104 = arith.mulf %102, %103 : vector<8x128xf32>
    %105 = arith.addf %93, %104 : vector<8x128xf32>
    %106 = vector.broadcast %3 : f32 to vector<8x128xf32>
    %107 = arith.mulf %64, %106 : vector<8x128xf32>
    %108 = vector.broadcast %18 : f32 to vector<8x128xf32>
    %109 = arith.mulf %66, %108 : vector<8x128xf32>
    %110 = arith.addf %107, %109 : vector<8x128xf32>
    %111 = vector.broadcast %33 : f32 to vector<8x128xf32>
    %112 = arith.addf %110, %111 : vector<8x128xf32>
    %cst_5 = arith.constant 0.000000e+00 : f32
    %113 = vector.broadcast %cst_5 : f32 to vector<8x128xf32>
    %114 = arith.maximumf %112, %113 : vector<8x128xf32>
    %115 = vector.broadcast %48 : f32 to vector<8x128xf32>
    %116 = arith.mulf %114, %115 : vector<8x128xf32>
    %117 = arith.addf %105, %116 : vector<8x128xf32>
    %118 = vector.broadcast %4 : f32 to vector<8x128xf32>
    %119 = arith.mulf %64, %118 : vector<8x128xf32>
    %120 = vector.broadcast %19 : f32 to vector<8x128xf32>
    %121 = arith.mulf %66, %120 : vector<8x128xf32>
    %122 = arith.addf %119, %121 : vector<8x128xf32>
    %123 = vector.broadcast %34 : f32 to vector<8x128xf32>
    %124 = arith.addf %122, %123 : vector<8x128xf32>
    %cst_6 = arith.constant 0.000000e+00 : f32
    %125 = vector.broadcast %cst_6 : f32 to vector<8x128xf32>
    %126 = arith.maximumf %124, %125 : vector<8x128xf32>
    %127 = vector.broadcast %49 : f32 to vector<8x128xf32>
    %128 = arith.mulf %126, %127 : vector<8x128xf32>
    %129 = arith.addf %117, %128 : vector<8x128xf32>
    %130 = vector.broadcast %5 : f32 to vector<8x128xf32>
    %131 = arith.mulf %64, %130 : vector<8x128xf32>
    %132 = vector.broadcast %20 : f32 to vector<8x128xf32>
    %133 = arith.mulf %66, %132 : vector<8x128xf32>
    %134 = arith.addf %131, %133 : vector<8x128xf32>
    %135 = vector.broadcast %35 : f32 to vector<8x128xf32>
    %136 = arith.addf %134, %135 : vector<8x128xf32>
    %cst_7 = arith.constant 0.000000e+00 : f32
    %137 = vector.broadcast %cst_7 : f32 to vector<8x128xf32>
    %138 = arith.maximumf %136, %137 : vector<8x128xf32>
    %139 = vector.broadcast %50 : f32 to vector<8x128xf32>
    %140 = arith.mulf %138, %139 : vector<8x128xf32>
    %141 = arith.addf %129, %140 : vector<8x128xf32>
    %142 = vector.broadcast %6 : f32 to vector<8x128xf32>
    %143 = arith.mulf %64, %142 : vector<8x128xf32>
    %144 = vector.broadcast %21 : f32 to vector<8x128xf32>
    %145 = arith.mulf %66, %144 : vector<8x128xf32>
    %146 = arith.addf %143, %145 : vector<8x128xf32>
    %147 = vector.broadcast %36 : f32 to vector<8x128xf32>
    %148 = arith.addf %146, %147 : vector<8x128xf32>
    %cst_8 = arith.constant 0.000000e+00 : f32
    %149 = vector.broadcast %cst_8 : f32 to vector<8x128xf32>
    %150 = arith.maximumf %148, %149 : vector<8x128xf32>
    %151 = vector.broadcast %51 : f32 to vector<8x128xf32>
    %152 = arith.mulf %150, %151 : vector<8x128xf32>
    %153 = arith.addf %141, %152 : vector<8x128xf32>
    %154 = vector.broadcast %7 : f32 to vector<8x128xf32>
    %155 = arith.mulf %64, %154 : vector<8x128xf32>
    %156 = vector.broadcast %22 : f32 to vector<8x128xf32>
    %157 = arith.mulf %66, %156 : vector<8x128xf32>
    %158 = arith.addf %155, %157 : vector<8x128xf32>
    %159 = vector.broadcast %37 : f32 to vector<8x128xf32>
    %160 = arith.addf %158, %159 : vector<8x128xf32>
    %cst_9 = arith.constant 0.000000e+00 : f32
    %161 = vector.broadcast %cst_9 : f32 to vector<8x128xf32>
    %162 = arith.maximumf %160, %161 : vector<8x128xf32>
    %163 = vector.broadcast %52 : f32 to vector<8x128xf32>
    %164 = arith.mulf %162, %163 : vector<8x128xf32>
    %165 = arith.addf %153, %164 : vector<8x128xf32>
    %166 = vector.broadcast %8 : f32 to vector<8x128xf32>
    %167 = arith.mulf %64, %166 : vector<8x128xf32>
    %168 = vector.broadcast %23 : f32 to vector<8x128xf32>
    %169 = arith.mulf %66, %168 : vector<8x128xf32>
    %170 = arith.addf %167, %169 : vector<8x128xf32>
    %171 = vector.broadcast %38 : f32 to vector<8x128xf32>
    %172 = arith.addf %170, %171 : vector<8x128xf32>
    %cst_10 = arith.constant 0.000000e+00 : f32
    %173 = vector.broadcast %cst_10 : f32 to vector<8x128xf32>
    %174 = arith.maximumf %172, %173 : vector<8x128xf32>
    %175 = vector.broadcast %53 : f32 to vector<8x128xf32>
    %176 = arith.mulf %174, %175 : vector<8x128xf32>
    %177 = arith.addf %165, %176 : vector<8x128xf32>
    %178 = vector.broadcast %9 : f32 to vector<8x128xf32>
    %179 = arith.mulf %64, %178 : vector<8x128xf32>
    %180 = vector.broadcast %24 : f32 to vector<8x128xf32>
    %181 = arith.mulf %66, %180 : vector<8x128xf32>
    %182 = arith.addf %179, %181 : vector<8x128xf32>
    %183 = vector.broadcast %39 : f32 to vector<8x128xf32>
    %184 = arith.addf %182, %183 : vector<8x128xf32>
    %cst_11 = arith.constant 0.000000e+00 : f32
    %185 = vector.broadcast %cst_11 : f32 to vector<8x128xf32>
    %186 = arith.maximumf %184, %185 : vector<8x128xf32>
    %187 = vector.broadcast %54 : f32 to vector<8x128xf32>
    %188 = arith.mulf %186, %187 : vector<8x128xf32>
    %189 = arith.addf %177, %188 : vector<8x128xf32>
    %190 = vector.broadcast %10 : f32 to vector<8x128xf32>
    %191 = arith.mulf %64, %190 : vector<8x128xf32>
    %192 = vector.broadcast %25 : f32 to vector<8x128xf32>
    %193 = arith.mulf %66, %192 : vector<8x128xf32>
    %194 = arith.addf %191, %193 : vector<8x128xf32>
    %195 = vector.broadcast %40 : f32 to vector<8x128xf32>
    %196 = arith.addf %194, %195 : vector<8x128xf32>
    %cst_12 = arith.constant 0.000000e+00 : f32
    %197 = vector.broadcast %cst_12 : f32 to vector<8x128xf32>
    %198 = arith.maximumf %196, %197 : vector<8x128xf32>
    %199 = vector.broadcast %55 : f32 to vector<8x128xf32>
    %200 = arith.mulf %198, %199 : vector<8x128xf32>
    %201 = arith.addf %189, %200 : vector<8x128xf32>
    %202 = vector.broadcast %11 : f32 to vector<8x128xf32>
    %203 = arith.mulf %64, %202 : vector<8x128xf32>
    %204 = vector.broadcast %26 : f32 to vector<8x128xf32>
    %205 = arith.mulf %66, %204 : vector<8x128xf32>
    %206 = arith.addf %203, %205 : vector<8x128xf32>
    %207 = vector.broadcast %41 : f32 to vector<8x128xf32>
    %208 = arith.addf %206, %207 : vector<8x128xf32>
    %cst_13 = arith.constant 0.000000e+00 : f32
    %209 = vector.broadcast %cst_13 : f32 to vector<8x128xf32>
    %210 = arith.maximumf %208, %209 : vector<8x128xf32>
    %211 = vector.broadcast %56 : f32 to vector<8x128xf32>
    %212 = arith.mulf %210, %211 : vector<8x128xf32>
    %213 = arith.addf %201, %212 : vector<8x128xf32>
    %214 = vector.broadcast %12 : f32 to vector<8x128xf32>
    %215 = arith.mulf %64, %214 : vector<8x128xf32>
    %216 = vector.broadcast %27 : f32 to vector<8x128xf32>
    %217 = arith.mulf %66, %216 : vector<8x128xf32>
    %218 = arith.addf %215, %217 : vector<8x128xf32>
    %219 = vector.broadcast %42 : f32 to vector<8x128xf32>
    %220 = arith.addf %218, %219 : vector<8x128xf32>
    %cst_14 = arith.constant 0.000000e+00 : f32
    %221 = vector.broadcast %cst_14 : f32 to vector<8x128xf32>
    %222 = arith.maximumf %220, %221 : vector<8x128xf32>
    %223 = vector.broadcast %57 : f32 to vector<8x128xf32>
    %224 = arith.mulf %222, %223 : vector<8x128xf32>
    %225 = arith.addf %213, %224 : vector<8x128xf32>
    %226 = vector.broadcast %13 : f32 to vector<8x128xf32>
    %227 = arith.mulf %64, %226 : vector<8x128xf32>
    %228 = vector.broadcast %28 : f32 to vector<8x128xf32>
    %229 = arith.mulf %66, %228 : vector<8x128xf32>
    %230 = arith.addf %227, %229 : vector<8x128xf32>
    %231 = vector.broadcast %43 : f32 to vector<8x128xf32>
    %232 = arith.addf %230, %231 : vector<8x128xf32>
    %cst_15 = arith.constant 0.000000e+00 : f32
    %233 = vector.broadcast %cst_15 : f32 to vector<8x128xf32>
    %234 = arith.maximumf %232, %233 : vector<8x128xf32>
    %235 = vector.broadcast %58 : f32 to vector<8x128xf32>
    %236 = arith.mulf %234, %235 : vector<8x128xf32>
    %237 = arith.addf %225, %236 : vector<8x128xf32>
    %238 = vector.broadcast %14 : f32 to vector<8x128xf32>
    %239 = arith.mulf %64, %238 : vector<8x128xf32>
    %240 = vector.broadcast %29 : f32 to vector<8x128xf32>
    %241 = arith.mulf %66, %240 : vector<8x128xf32>
    %242 = arith.addf %239, %241 : vector<8x128xf32>
    %243 = vector.broadcast %44 : f32 to vector<8x128xf32>
    %244 = arith.addf %242, %243 : vector<8x128xf32>
    %cst_16 = arith.constant 0.000000e+00 : f32
    %245 = vector.broadcast %cst_16 : f32 to vector<8x128xf32>
    %246 = arith.maximumf %244, %245 : vector<8x128xf32>
    %247 = vector.broadcast %59 : f32 to vector<8x128xf32>
    %248 = arith.mulf %246, %247 : vector<8x128xf32>
    %249 = arith.addf %237, %248 : vector<8x128xf32>
    %cst_17 = arith.constant -8.000000e+01 : f32
    %250 = vector.broadcast %cst_17 : f32 to vector<8x128xf32>
    %251 = arith.maximumf %249, %250 : vector<8x128xf32>
    %cst_18 = arith.constant 0.000000e+00 : f32
    %252 = vector.broadcast %cst_18 : f32 to vector<8x128xf32>
    %253 = arith.subf %252, %251 : vector<8x128xf32>
    %254 = math.exp %253 : vector<8x128xf32>
    %cst_19 = arith.constant 1.000000e+00 : f32
    %255 = vector.broadcast %cst_19 : f32 to vector<8x128xf32>
    %256 = arith.addf %255, %254 : vector<8x128xf32>
    %257 = tpu.reciprocal %256 {approx = true} : vector<8x128xf32> -> vector<8x128xf32>
    %258 = arith.mulf %256, %257 : vector<8x128xf32>
    %cst_20 = arith.constant 2.000000e+00 : f32
    %259 = vector.broadcast %cst_20 : f32 to vector<8x128xf32>
    %260 = arith.subf %259, %258 : vector<8x128xf32>
    %261 = arith.mulf %257, %260 : vector<8x128xf32>
    %cst_21 = arith.constant 1.000000e+00 : f32
    %262 = vector.broadcast %cst_21 : f32 to vector<8x128xf32>
    %263 = arith.subf %262, %261 : vector<8x128xf32>
    %c0_22 = arith.constant 0 : index
    %264 = arith.index_cast %62 : i32 to index
    %265 = vector.load %arg3[%c0_22, %264] : memref<16x128xf32, #tpu.memory_space<vmem>>, vector<8x128xf32>
    tpu.vector_store %arg3[%c0_22, %264], %263 {strides = array<i32>} : memref<16x128xf32, #tpu.memory_space<vmem>>, vector<8x128xf32>,
    %c8_23 = arith.constant 8 : index
    %266 = arith.index_cast %62 : i32 to index
    %267 = vector.load %arg3[%c8_23, %266] : memref<16x128xf32, #tpu.memory_space<vmem>>, vector<8x128xf32>
    tpu.vector_store %arg3[%c8_23, %266], %261 {strides = array<i32>} : memref<16x128xf32, #tpu.memory_space<vmem>>, vector<8x128xf32>,
    %c1_i32 = arith.constant 1 : i32
    return
  }
  func.func @transform_0(%arg0: i32) -> i32 {
    %c0_i32 = arith.constant 0 : i32
    %c0_i32_0 = arith.constant 0 : i32
    return %c0_i32 : i32
  }
  func.func @transform_1(%arg0: i32) -> (i32, i32) {
    %c0_i32 = arith.constant 0 : i32
    %c0_i32_0 = arith.constant 0 : i32
    return %c0_i32, %arg0 : i32, i32
  }
  func.func @transform_2(%arg0: i32) -> (i32, i32) {
    %c0_i32 = arith.constant 0 : i32
    %c0_i32_0 = arith.constant 0 : i32
    return %c0_i32, %arg0 : i32, i32
  }
}

</mosaic_0001>

<bundles_post_ra>
// kernel: tpu_custom_call.1
= control target key start
LH: loop header
LB: loop body
LE: loop exit
PB: predicated region body
PF: predicated region fallthrough
CT: control target
= control target key end

     0   :  { %7 = vsyncpa [#allocation5], 0  ;;  %s717_s0 = inlined_call_operand.hbm [shape: f32[64], index: 0, kind: input, shape index: {}]   ;;  %s718_s1 = inlined_call_operand.hbm [shape: f32[16,128], index: 1, kind: input, shape index: {}]   ;;  %s719_s2 = inlined_call_operand.hbm [shape: f32[16,128], index: 2, kind: output, shape index: {}]  }
   0x1   :  { %8 = vsyncpa [#allocation3], 0 }
   0x2   :  { %9 = vsyncpa [#allocation4], 0  ;;  %s366_s11 = scalar_lea.hbm %s717_s0, 16 }
   0x3   :  { %p367_p0 = scmp.ne.s32.totalorder %s717_s0, %s366_s11  ;;  %p370_p1 = scmp.lt.u32.totalorder %s366_s11, %s717_s0 }
   0x5   :  { %p372_p2 = pnand %p370_p1, %p367_p0 }
   0x7   :  { %375 = shalt.err (!%p372_p2)
}
   0x8   :  { %s426_s16 = smov [#allocation2]   ;;  %s427_s19 = smov [#allocation6]  }
   0x9   :  { %17 = dma.hbm_to_smem %s717_s0, 16, %s426_s16, [#allocation5]  }
   0xa   :  { %s23_s20 = sshll.u32 %s427_s19, 4  ;;  %s376_s23 = scalar_lea.hbm %s718_s1, 256  ;;  %s24_s20 = int_to_ptr.vmem [resolvable:$true] %s23_s20 }
   0xb   :  { %p377_p3 = scmp.ne.s32.totalorder %s718_s1, %s376_s23  ;;  %p380_p4 = scmp.lt.u32.totalorder %s376_s23, %s718_s1 }
   0xd   :  { %p382_p5 = pnand %p380_p4, %p377_p3 }
   0xf   :  { %385 = shalt.err (!%p382_p5)
}
  0x10   :  { %s386_s28 = scalar_lea.vmem %s24_s20, 256  ;;  %p391_p7 = scmp.lt.s32.totalorder %s24_s20, %s24_s20 }
  0x11   :  { %p387_p6 = scmp.ne.s32.totalorder %s24_s20, %s386_s28  ;;  %p392_p8 = scmp.lt.s32.totalorder %s386_s28, %s386_s28 }
  0x13   :  { %p393_p9 = por %p392_p8, %p391_p7 }
  0x15   :  { %p394_p10 = pnand %p393_p9, %p387_p6 }
  0x17   :  { %397 = shalt.err (!%p394_p10)
}
  0x18   :  { %s428_s0 = smov 128   ;;  %s429_s29 = smov 8  }
  0x19   :  { %29 = dma.hbm_to_vmem [thread:$0]  %s718_s1, 256, %s24_s20, [#allocation3], %s428_s0, %s428_s0, %s429_s29  }
  0x1a   :  { %420 = dma.done.wait [#allocation5], 16  }
  0x1b   :  { %421 = vsyncadd [#allocation5], 4294967280 }
  0x1c   :  { %422 = dma.done.wait [#allocation3], 256  }
  0x1d   :  { %423 = vsyncadd [#allocation3], 4294967040 }
  0x1e   :  { %36 = sfence }
  0x1f   :  { %s473_s4 = sld [smem:[#allocation2]]  ;;  %s475_s5 = sld [smem:[#allocation2 + $0x1]]  ;;  %v507_v0 = vld [vmem:[#allocation6] sm:$0xff]  ;;  %v514_v2 = vld [vmem:[#allocation6 + $0x8] sm:$0xff] }
  0x20   :  { %s477_s6 = sld [smem:[#allocation2 + $0x2]]  ;;  %s479_s7 = sld [smem:[#allocation2 + $0x3]] }
  0x21   :  { %s481_s8 = sld [smem:[#allocation2 + $0x4]]  ;;  %s483_s9 = sld [smem:[#allocation2 + $0x5]] }
  0x22   :  { %s485_s10 = sld [smem:[#allocation2 + $0x6]]  ;;  %s311_s1 = sld [smem:[#allocation2 + $0xf]] }
  0x23   :  { %s487_s11 = sld [smem:[#allocation2 + $0x7]]  ;;  %s489_s12 = sld [smem:[#allocation2 + $0x10]] }
  0x24   :  { %s491_s13 = sld [smem:[#allocation2 + $0x8]]  ;;  %s493_s14 = sld [smem:[#allocation2 + $0x11]] }
  0x25   :  { %s495_s15 = sld [smem:[#allocation2 + $0x9]]  ;;  %s497_s16 = sld [smem:[#allocation2 + $0x12]]  ;;  %v102_v1 = vstv %s473_s4  ;;  %v113_v4 = vstv %s475_s5 }
  0x26   :  { %s499_s17 = sld [smem:[#allocation2 + $0x13]]  ;;  %s501_s18 = sld [smem:[#allocation2 + $0x14]]  ;;  %v124_v5 = vstv %s477_s6  ;;  %v135_v6 = vstv %s479_s7  ;;  %v103_v9 = vmul.f32 %v102_v1, %v507_v0  ;;  %v114_v14 = vmul.f32 %v113_v4, %v507_v0 }
  0x27   :  { %s503_s19 = sld [smem:[#allocation2 + $0xa]]  ;;  %s505_s20 = sld [smem:[#allocation2 + $0xb]]  ;;  %v146_v7 = vstv %s481_s8  ;;  %v157_v8 = vstv %s483_s9  ;;  %v125_v15 = vmul.f32 %v124_v5, %v507_v0  ;;  %v136_v18 = vmul.f32 %v135_v6, %v507_v0 }
  0x28   :  { %s510_s21 = sld [smem:[#allocation2 + $0xc]]  ;;  %s512_s22 = sld [smem:[#allocation2 + $0x15]]  ;;  %v104_v3 = vstv %s311_s1  ;;  %v168_v11 = vstv %s485_s10  ;;  %v147_v19 = vmul.f32 %v146_v7, %v507_v0  ;;  %v158_v20 = vmul.f32 %v157_v8, %v507_v0 }
  0x29   :  { %s518_s23 = sld [smem:[#allocation2 + $0x16]]  ;;  %s525_s25 = sld [smem:[#allocation2 + $0x1f]]  ;;  %v115_v10 = vstv %s489_s12  ;;  %v179_v12 = vstv %s487_s11  ;;  %v105_v13 = vmul.f32 %v104_v3, %v514_v2  ;;  %v169_v23 = vmul.f32 %v168_v11, %v507_v0 }
  0x2a   :  { %s520_s24 = sld [smem:[#allocation2 + $0x1e]]  ;;  %s531_s26 = sld [smem:[#allocation2 + $0xd]]  ;;  %v190_v16 = vstv %s491_s13  ;;  %v126_v17 = vstv %s493_s14  ;;  %v116_v21 = vmul.f32 %v115_v10, %v514_v2  ;;  %v180_v24 = vmul.f32 %v179_v12, %v507_v0 }
  0x2b   :  { %s537_s27 = sld [smem:[#allocation2 + $0xe]]  ;;  %s539_s28 = sld [smem:[#allocation2 + $0x20]]  ;;  %v137_v22 = vstv %s497_s16  ;;  %v560_v27 = vmul.f32 %v190_v16, %v507_v0  ;;  %v201_v28 = vstv %s495_s15  ;;  %v106_v29 = vadd.f32 %v105_v13, %v103_v9 }
  0x2c   :  { %s545_s30 = sld [smem:[#allocation2 + $0x17]]  ;;  %s547_s3 = sld [smem:[#allocation2 + $0x21]]  ;;  %v148_v25 = vstv %s499_s17  ;;  %v159_v26 = vstv %s501_s18  ;;  %v127_v30 = vmul.f32 %v126_v17, %v514_v2  ;;  %v138_v34 = vmul.f32 %v137_v22, %v514_v2 }
  0x2d   :  { %s553_s4 = sld [smem:[#allocation2 + $0x22]]  ;;  %s555_s5 = sld [smem:[#allocation2 + $0x23]]  ;;  %v212_v31 = vstv %s503_s19  ;;  %v223_v32 = vstv %s505_s20  ;;  %v117_v37 = vadd.f32 %v116_v21, %v114_v14  ;;  %v149_v38 = vmul.f32 %v148_v25, %v514_v2 }
  0x2e   :  { %s563_s6 = sld [smem:[#allocation2 + $0x18]]  ;;  %s568_s7 = sld [smem:[#allocation2 + $0x19]]  ;;  %v170_v35 = vstv %s512_s22  ;;  %v234_v36 = vstv %s510_s21  ;;  %v160_v39 = vmul.f32 %v159_v26, %v514_v2  ;;  %v587_v42 = vmul.f32 %v201_v28, %v507_v0 }
  0x2f   :  { %s570_s8 = sld [smem:[#allocation2 + $0x2d]]  ;;  %s576_s9 = sld [smem:[#allocation2 + $0x24]]  ;;  %v181_v40 = vstv %s518_s23  ;;  %v118_v41 = vstv %s525_s25  ;;  %v590_v43 = vmul.f32 %v212_v31, %v507_v0  ;;  %v593_v44 = vmul.f32 %v223_v32, %v507_v0 }
  0x30   :  { %v107_v33 = vstv %s520_s24  ;;  %s581_s10 = sld [smem:[#allocation2 + $0x25]]  ;;  %s583_s1 = sld [smem:[#allocation2 + $0x2e]]  ;;  %v128_v46 = vadd.f32 %v127_v30, %v125_v15  ;;  %v171_v47 = vmul.f32 %v170_v35, %v514_v2  ;;  %v245_v48 = vstv %s531_s26 }
  0x31   :  { %v108_v45 = vadd.f32 %v107_v33, %v106_v29  ;;  %s597_s11 = sld [smem:[#allocation2 + $0x2f]]  ;;  %v129_v49 = vstv %s539_s28  ;;  %v139_v50 = vadd.f32 %v138_v34, %v136_v18  ;;  %v182_v51 = vmul.f32 %v181_v40, %v514_v2  ;;  %s604_s12 = sld [smem:[#allocation2 + $0x1a]] }
  0x32   :  { %v602_v52 = vmul.f32 %v234_v36, %v507_v0  ;;  %v119_v53 = vadd.f32 %v118_v41, %v117_v37  ;;  %v140_v54 = vstv %s547_s3  ;;  %v150_v55 = vadd.f32 %v149_v38, %v147_v19  ;;  %s607_s13 = sld [smem:[#allocation2 + $0x1b]]  ;;  %s609_s14 = sld [smem:[#allocation2 + $0x30]] }
  0x33   :  { %v161_v56 = vadd.f32 %v160_v39, %v158_v20  ;;  %v151_v57 = vstv %s553_s4  ;;  %v162_v58 = vstv %s555_s5  ;;  %v192_v59 = vstv %s545_s30  ;;  %s615_s15 = sld [smem:[#allocation2 + $0x26]]  ;;  %s617_s16 = sld [smem:[#allocation2 + $0x27]] }
  0x34   :  { %v256_v60 = vstv %s537_s27  ;;  %v109_v61 = vmax.f32 %v108_v45, 0.0  ;;  %v130_v62 = vadd.f32 %v129_v49, %v128_v46  ;;  %v172_v63 = vadd.f32 %v171_v47, %v169_v23  ;;  %s620_s17 = sld [smem:[#allocation2 + $0x31]]  ;;  %s622_s18 = sld [smem:[#allocation2 + $0x3c]] }
  0x35   :  { %v203_v1 = vstv %s563_s6  ;;  %v110_v3 = vstv %s570_s8  ;;  %v141_v4 = vadd.f32 %v140_v54, %v139_v50  ;;  %v183_v5 = vadd.f32 %v182_v51, %v180_v24  ;;  %s626_s19 = sld [smem:[#allocation2 + $0x32]]  ;;  %s629_s20 = sld [smem:[#allocation2 + $0x1c]] }
  0x36   :  { %v214_v6 = vstv %s568_s7  ;;  %v120_v7 = vmax.f32 %v119_v53, 0.0  ;;  %v152_v8 = vadd.f32 %v151_v57, %v150_v55  ;;  %v163_v9 = vadd.f32 %v162_v58, %v161_v56  ;;  %s637_s21 = sld [smem:[#allocation2 + $0x1d]]  ;;  %s639_s22 = sld [smem:[#allocation2 + $0x33]] }
  0x37   :  { %v173_v10 = vstv %s576_s9  ;;  %v121_v11 = vstv %s583_s1  ;;  %v184_v12 = vstv %s581_s10  ;;  %v193_v13 = vmul.f32 %v192_v59, %v514_v2  ;;  %s645_s23 = sld [smem:[#allocation2 + $0x28]]  ;;  %s647_s24 = sld [smem:[#allocation2 + $0x34]] }
  0x38   :  { %v635_v14 = vmul.f32 %v245_v48, %v507_v0  ;;  %v111_v15 = vmul.f32 %v110_v3, %v109_v61  ;;  %v131_v16 = vmax.f32 %v130_v62, 0.0  ;;  %v204_v17 = vmul.f32 %v203_v1, %v514_v2  ;;  %s651_s25 = sld [smem:[#allocation2 + $0x29]]  ;;  %s653_s26 = sld [smem:[#allocation2 + $0x35]] }
  0x39   :  { %v643_v18 = vmul.f32 %v256_v60, %v507_v0  ;;  %v132_v19 = vstv %s597_s11  ;;  %v142_v20 = vmax.f32 %v141_v4, 0.0  ;;  %v174_v21 = vadd.f32 %v173_v10, %v172_v63  ;;  %s661_s27 = sld [smem:[#allocation2 + $0x2a]]  ;;  %s668_s28 = sld [smem:[#allocation2 + $0x2b]] }
  0x3a   :  { %v215_v22 = vmul.f32 %v214_v6, %v514_v2  ;;  %v122_v23 = vmul.f32 %v121_v11, %v120_v7  ;;  %v153_v24 = vmax.f32 %v152_v8, 0.0  ;;  %v164_v25 = vmax.f32 %v163_v9, 0.0  ;;  %s670_s30 = sld [smem:[#allocation2 + $0x36]]  ;;  %s676_s3 = sld [smem:[#allocation2 + $0x2c]] }
  0x3b   :  { %v185_v26 = vadd.f32 %v184_v12, %v183_v5  ;;  %v100_v0 = vstv %s622_s18  ;;  %v143_v28 = vstv %s609_s14  ;;  %v194_v29 = vadd.f32 %v193_v13, %v560_v27  ;;  %s678_s4 = sld [smem:[#allocation2 + $0x37]]  ;;  %s685_s5 = sld [smem:[#allocation2 + $0x38]] }
  0x3c   :  { %v225_v30 = vstv %s604_s12  ;;  %v112_v31 = vadd.f32 %v111_v15, %v100_v0  ;;  %v133_v32 = vmul.f32 %v132_v19, %v131_v16  ;;  %v195_v33 = vstv %s615_s15  ;;  %s691_s6 = sld [smem:[#allocation2 + $0x39]]  ;;  %s354_s7 = sld [smem:[#allocation2 + $0x3a]] }
  0x3d   :  { %v205_v34 = vadd.f32 %v204_v17, %v587_v42  ;;  %v154_v35 = vstv %s620_s17  ;;  %v175_v36 = vmax.f32 %v174_v21, 0.0  ;;  %v206_v37 = vstv %s617_s16  ;;  %s355_s8 = sld [smem:[#allocation2 + $0x3b]]  ;;  %s430_s9 = smov [#allocation7]  }
  0x3e   :  { %v236_v38 = vstv %s607_s13  ;;  %v123_v39 = vadd.f32 %v122_v23, %v112_v31  ;;  %v144_v40 = vmul.f32 %v143_v28, %v142_v20  ;;  %v165_v41 = vstv %s626_s19  ;;  %s284_s10 = sshll.u32 %s430_s9, 4  ;;  %s285_s10 = int_to_ptr.vmem [resolvable:$true] %s284_s10 }
  0x3f   :  { %v226_v27 = vmul.f32 %v225_v30, %v514_v2  ;;  %v186_v42 = vmax.f32 %v185_v26, 0.0  ;;  %v196_v45 = vadd.f32 %v195_v33, %v194_v29  ;;  %v216_v46 = vadd.f32 %v215_v22, %v590_v43  ;;  %s398_s1 = scalar_lea.vmem %s285_s10, 256  ;;  %p403_p12 = scmp.lt.s32.totalorder %s285_s10, %s285_s10 }
  0x40   :  { %v247_v47 = vstv %s629_s20  ;;  %v134_v48 = vadd.f32 %v133_v32, %v123_v39  ;;  %v155_v49 = vmul.f32 %v154_v35, %v153_v24  ;;  %v176_v50 = vstv %s639_s22  ;;  %p399_p11 = scmp.ne.s32.totalorder %s285_s10, %s398_s1  ;;  %p404_p13 = scmp.lt.s32.totalorder %s398_s1, %s398_s1 }
  0x41   :  { %v237_v51 = vmul.f32 %v236_v38, %v514_v2  ;;  %v166_v53 = vmul.f32 %v165_v41, %v164_v25  ;;  %v187_v54 = vstv %s647_s24  ;;  %v217_v55 = vstv %s645_s23 }
  0x42   :  { %v258_v56 = vstv %s637_s21  ;;  %v145_v57 = vadd.f32 %v144_v40, %v134_v48  ;;  %v207_v58 = vadd.f32 %v206_v37, %v205_v34  ;;  %v227_v43 = vadd.f32 %v226_v27, %v593_v44  ;;  %p405_p0 = por %p404_p13, %p403_p12 }
  0x43   :  { %v248_v59 = vmul.f32 %v247_v47, %v514_v2  ;;  %v177_v60 = vmul.f32 %v176_v50, %v175_v36  ;;  %v197_v61 = vmax.f32 %v196_v45, 0.0  ;;  %v198_v62 = vstv %s653_s26 }
  0x44   :  { %v228_v63 = vstv %s651_s25  ;;  %v156_v1 = vadd.f32 %v155_v49, %v145_v57  ;;  %v218_v3 = vadd.f32 %v217_v55, %v216_v46  ;;  %v238_v4 = vadd.f32 %v237_v51, %v602_v52  ;;  %p406_p1 = pnand %p405_p0, %p399_p11 }
  0x45   :  { %v259_v5 = vmul.f32 %v258_v56, %v514_v2  ;;  %v188_v44 = vmul.f32 %v187_v54, %v186_v42  ;;  %v239_v6 = vstv %s661_s27  ;;  %v208_v8 = vmax.f32 %v207_v58, 0.0 }
  0x46   :  { %v167_v7 = vadd.f32 %v166_v53, %v156_v1  ;;  %v229_v9 = vadd.f32 %v228_v63, %v227_v43  ;;  %v249_v10 = vadd.f32 %v248_v59, %v635_v14  ;;  %v199_v11 = vmul.f32 %v198_v62, %v197_v61 }
  0x47   :  { %v209_v12 = vstv %s670_s30  ;;  %v250_v13 = vstv %s668_s28  ;;  %v219_v52 = vmax.f32 %v218_v3, 0.0  ;;  %v240_v2 = vadd.f32 %v239_v6, %v238_v4 }
  0x48   :  { %v178_v15 = vadd.f32 %v177_v60, %v167_v7  ;;  %v260_v16 = vadd.f32 %v259_v5, %v643_v18  ;;  %v220_v17 = vstv %s678_s4  ;;  %v261_v19 = vstv %s676_s3 }
  0x49   :  { %v210_v21 = vmul.f32 %v209_v12, %v208_v8  ;;  %v230_v22 = vmax.f32 %v229_v9, 0.0  ;;  %v251_v23 = vadd.f32 %v250_v13, %v249_v10  ;;  %v231_v24 = vstv %s685_s5 }
  0x4a   :  { %v189_v20 = vadd.f32 %v188_v44, %v178_v15  ;;  %v221_v25 = vmul.f32 %v220_v17, %v219_v52  ;;  %v241_v26 = vmax.f32 %v240_v2, 0.0  ;;  %v262_v0 = vadd.f32 %v261_v19, %v260_v16 }
  0x4b   :  { %v242_v28 = vstv %s691_s6  ;;  %v232_v30 = vmul.f32 %v231_v24, %v230_v22  ;;  %v252_v31 = vmax.f32 %v251_v23, 0.0  ;;  %v253_v32 = vstv %s354_s7 }
  0x4c   :  { %v200_v14 = vadd.f32 %v199_v11, %v189_v20  ;;  %v243_v34 = vmul.f32 %v242_v28, %v241_v26  ;;  %v263_v18 = vmax.f32 %v262_v0, 0.0  ;;  %v264_v35 = vstv %s355_s8 }
  0x4d   :  { %v254_v37 = vmul.f32 %v253_v32, %v252_v31 }
  0x4e   :  { %v211_v29 = vadd.f32 %v210_v21, %v200_v14  ;;  %v265_v39 = vmul.f32 %v264_v35, %v263_v18 }
  0x50   :  { %v222_v33 = vadd.f32 %v221_v25, %v211_v29 }
  0x52   :  { %v233_v36 = vadd.f32 %v232_v30, %v222_v33 }
  0x54   :  { %v244_v38 = vadd.f32 %v243_v34, %v233_v36 }
  0x56   :  { %v255_v40 = vadd.f32 %v254_v37, %v244_v38 }
  0x58   :  { %v266_v41 = vadd.f32 %v265_v39, %v255_v40 }
  0x5a   :  { %v267_v27 = vmax.f32 %v266_v41, -80.0 }
  0x5c   :  { %v268_v42 = vsub.f32 0.0, %v267_v27 }
  0x5e   :  { %v269_v45 = vmul.f32 1.442695, %v268_v42 }
  0x60   :  { %362 = vpow2.f32 %v269_v45 }
  0x6a   :  { %v363_v46 = vpop.eup %362 }
  0x6b   :  { %v271_v47 = vadd.f32 1.0, %v363_v46 }
  0x6d   :  { %364 = vrcp.f32 %v271_v47 }
  0x77   :  { %v365_v48 = vpop.eup %364 }
  0x78   :  { %v273_v49 = vmul.f32 %v365_v48, %v271_v47 }
  0x7a   :  { %v274_v50 = vsub.f32 2.0, %v273_v49 }
  0x7c   :  { %v275_v51 = vmul.f32 %v365_v48, %v274_v50 }
  0x7e   :  { %v276_v53 = vsub.f32 1.0, %v275_v51  ;;  %278 = vst [vmem:[#allocation7 + $0x8] sm:$0xff] %v275_v51 }
  0x80   :  { %277 = vst [vmem:[#allocation7] sm:$0xff] %v276_v53 }
  0x81   :  { %409 = shalt.err (!%p406_p1)
}
  0x82   :  { %s410_s13 = scalar_lea.hbm %s719_s2, 256 }
  0x83   :  { %p411_p2 = scmp.ne.s32.totalorder %s719_s2, %s410_s13  ;;  %p414_p3 = scmp.lt.u32.totalorder %s410_s13, %s719_s2 }
  0x85   :  { %p416_p4 = pnand %p414_p3, %p411_p2 }
  0x87   :  { %419 = shalt.err (!%p416_p4)
}
  0x88   :  { %290 = dma.vmem_to_hbm [thread:$0]  %s285_s10, 256, %s719_s2, [#allocation4], %s428_s0, %s428_s0, %s429_s29  }
  0x89   :  { %424 = dma.done.wait [#allocation4], 256  }
  0x8a   :  { %425 = vsyncadd [#allocation4], 4294967040 }
  0x8b   :  { %294 = vsyncpa [#allocation3], 1 }
  0x8c   :  { %295 = vsyncpa [#allocation4], 1 }
  0x8d   :  { %296 = vsyncpa [#allocation5], 1 }

</bundles_post_ra>
